<compile_context>
chip_gen: v7x
topology: tpu7x:2x2x1
jax: 0.10.0
libtpu: 0.0.40
codegen_flags: <defaults>
</compile_context>

<pallas_src>
import jax
import jax.numpy as jnp
from jax.experimental import pallas as pl
from jax.experimental.pallas import tpu as pltpu


def _round_up(x, m):
    return ((x + m - 1) // m) * m


def _vmem_capacity_bytes():
    # Conservative fallback (v7x per-TC VMEM = 64 MiB) if introspection fails.
    try:
        return int(pltpu.get_tpu_info().vmem_capacity_bytes)
    except Exception:
        return 64 << 20


# ----------------------------- Pallas kernel ------------------------------
def _lm_head_kernel(h_ref, w_ref, o_ref):
    # h_ref: [tile_m, D]      hidden tile (native dtype; cast to bf16 here on
    #                         the VPU — free under the MXU-bound loop).
    # w_ref: [D, tile_v]      bf16 tied-weight tile, pre-transposed/pre-padded.
    # o_ref: [tile_m, tile_v] logits tile.
    h = h_ref[...].astype(jnp.bfloat16)
    o_ref[...] = jnp.dot(
        h, w_ref[...], preferred_element_type=jnp.float32
    ).astype(o_ref.dtype)


# --------------------------- weight preparation ----------------------------
def prepare_lm_head_weight(wte, *, tile_v=512):
    """One-time prep of the tied lm_head weight.

    Transposes to the MXU-native [D, V] orientation, casts to bf16, and pads
    V up to a multiple of tile_v, so the per-call path never re-touches the
    full weight outside the kernel.  Returns (w_prepared, tile_v).

    NOTE (weight tying): if wte is updated (training), this prepared copy must
    be refreshed (DecoderPallas.retie_lm_head) to keep the tying invariant.
    """
    V, D = wte.shape
    tile_v = max(128, min(tile_v, _round_up(V, 128)))
    V_pad = _round_up(V, tile_v)
    w = wte.T.astype(jnp.bfloat16)          # [D, V] — no in-kernel transpose
    if V_pad != V:
        w = jnp.pad(w, ((0, 0), (0, V_pad - V)))
    return w, tile_v


# ------------------------------- lm_head call -------------------------------
def lm_head_pallas(hidden_states, w_prepared, vocab_size, *, tile_v,
                   tile_m=None, out_dtype=jnp.bfloat16):
    """Tied lm_head:  logits = hidden_states @ wte.T  via Pallas.

    hidden_states: [B, T, D] (any float dtype; cast to bf16 inside the kernel)
    w_prepared:    [D, V_pad] bf16, from prepare_lm_head_weight (V_pad % tile_v == 0)
    returns:       [B, T, vocab_size] logits in out_dtype (f32 MXU accumulate).
    Numerics are bf16-level on the inputs; pass out_dtype=jnp.float32 if f32
    logits are required downstream.
    """
    B, T, D = hidden_states.shape
    D2, V_pad = w_prepared.shape
    assert D == D2 and V_pad % tile_v == 0
    M = B * T
    h2d = hidden_states.reshape(M, D)       # no wrapper-side cast

    out_bytes = jnp.dtype(out_dtype).itemsize
    h_bytes = jnp.dtype(h2d.dtype).itemsize
    vmem_cap = _vmem_capacity_bytes()
    budget = int(vmem_cap * 0.8)

    if tile_m is None:
        # Largest output-stationary M tile that keeps double-buffered
        # hidden + weight + output tiles under the chip's VMEM budget
        # (64 MiB on v7x, 128 MiB on v5e/v6e).
        tile_m = 16
        for cand in (1024, 768, 512, 384, 256, 128, 64, 32, 16):
            need = (2 * cand * D * h_bytes          # hidden tiles
                    + 2 * D * tile_v * 2            # bf16 weight tiles
                    + 2 * cand * tile_v * out_bytes  # output tiles
                    + (2 << 20))
            if need <= budget:
                tile_m = cand
                break
    # Never overshoot small M (decode) by more than 16-row sublane packing.
    tile_m = max(16, min(tile_m, _round_up(M, 16)))

    M_pad = _round_up(M, tile_m)
    if M_pad != M:
        h2d = jnp.pad(h2d, ((0, M_pad - M), (0, 0)))

    # M outer / V inner: hidden block index is constant along the inner V axis
    # -> stays VMEM-resident, streamed from HBM once per M tile.  The weight
    # is re-streamed grid[0] times (1x for decode-sized M).
    grid = (M_pad // tile_m, V_pad // tile_v)

    vmem_bytes = (2 * tile_m * D * h_bytes
                  + 2 * D * tile_v * 2
                  + 2 * tile_m * tile_v * out_bytes
                  + (4 << 20))
    vmem_bytes = int(min(max(vmem_bytes, 16 << 20), int(vmem_cap * 0.9)))

    cost = pl.CostEstimate(
        flops=2 * M_pad * V_pad * D,
        transcendentals=0,
        bytes_accessed=(M_pad * D * h_bytes                 # hidden, once
                        + grid[0] * D * V_pad * 2           # weight re-stream
                        + M_pad * V_pad * out_bytes),        # logits, out dtype
    )

    out = pl.pallas_call(
        _lm_head_kernel,
        out_shape=jax.ShapeDtypeStruct((M_pad, V_pad), out_dtype),
        grid_spec=pltpu.PrefetchScalarGridSpec(
            num_scalar_prefetch=0,
            grid=grid,
            in_specs=[
                pl.BlockSpec((tile_m, D), lambda i, j: (i, 0)),   # hidden tile
                pl.BlockSpec((D, tile_v), lambda i, j: (0, j)),   # weight tile
            ],
            out_specs=pl.BlockSpec((tile_m, tile_v), lambda i, j: (i, j)),
        ),
        compiler_params=pltpu.CompilerParams(
            dimension_semantics=("parallel", "parallel"),  # V stays parallel
            vmem_limit_bytes=vmem_bytes,                   # (v7x 2-TC sharding)
        ),
        cost_estimate=cost,
    )(h2d, w_prepared)

    # Padding was avoided on the common path; slice only if it happened.
    if M_pad != M:
        out = out[:M]
    if V_pad != vocab_size:
        out = out[:, :vocab_size]
    return out.reshape(B, T, vocab_size)


# --------------------------- Decoder (wrapper) -----------------------------
class DecoderPallas:
    """JAX/Pallas port of the PyTorch Decoder module.

    The opaque `core_module` transformer body is represented by a minimal
    deterministic stand-in (sum of token / type / position embeddings).  The
    Decoder-owned compute — the weight-tied lm_head — is the Pallas kernel.
    """

    def __init__(self, key, vocab_size, embed_dim, max_pos, n_types,
                 pad_id=0, tile_v=512, logits_dtype=jnp.bfloat16):
        k1, k2, k3 = jax.random.split(key, 3)
        self.pad_id = pad_id
        self.vocab_size = vocab_size
        self.logits_dtype = logits_dtype
        self.wte = jax.random.normal(k1, (vocab_size, embed_dim), jnp.float32) * 0.02
        self.wpe = jax.random.normal(k2, (max_pos, embed_dim), jnp.float32) * 0.02
        self.tte = jax.random.normal(k3, (n_types, embed_dim), jnp.float32) * 0.02
        # lm_head.weight is tied to wte: prepared (transposed/bf16/padded) ONCE.
        self.lm_head_w, self.tile_v = prepare_lm_head_weight(self.wte, tile_v=tile_v)

    def retie_lm_head(self):
        """Refresh the prepared lm_head copy after any update to wte."""
        self.lm_head_w, self.tile_v = prepare_lm_head_weight(self.wte,
                                                             tile_v=self.tile_v)

    def _core_module(self, input_ids, token_type_ids, position_ids,
                     encoder_memory, cross_attention_mask, past=None):
        # TODO(synk): core_module (GPT-2-style decoder body with cross attention)
        # is an external opaque submodule; stand-in returns the embedding sum and
        # ignores encoder_memory / cross_attention_mask / past.
        hidden = (self.wte[input_ids]
                  + self.wpe[position_ids]
                  + self.tte[token_type_ids])
        return hidden, past

    def __call__(self, tgt, tgt_type_ids, tgt_position_ids, encoder_memory,
                 cross_attention_mask, past=None, return_past=False):
        hidden_states, past = self._core_module(
            tgt, tgt_type_ids, tgt_position_ids,
            encoder_memory, cross_attention_mask, past)
        lm_logits = lm_head_pallas(hidden_states, self.lm_head_w,
                                   self.vocab_size, tile_v=self.tile_v,
                                   out_dtype=self.logits_dtype)
        if return_past:
            return lm_logits, past
        return lm_logits


# --------------------------------- main ------------------------------------
if __name__ == "__main__":
    key = jax.random.PRNGKey(0)
    k_model, k_tgt, k_type, k_mem = jax.random.split(key, 4)

    B, T = 2, 8           # batch, target sequence length
    D = 32                # embed_dim
    V = 256               # vocab_size (multiple of 128 -> no pad / no slice)
    MAX_POS = 32
    N_TYPES = 2
    S_ENC = 8             # encoder memory length

    decoder = DecoderPallas(k_model, vocab_size=V, embed_dim=D,
                            max_pos=MAX_POS, n_types=N_TYPES, pad_id=0)

    tgt = jax.random.randint(k_tgt, (B, T), 0, V, dtype=jnp.int32)
    tgt_type_ids = jax.random.randint(k_type, (B, T), 0, N_TYPES, dtype=jnp.int32)
    tgt_position_ids = jnp.broadcast_to(jnp.arange(T, dtype=jnp.int32), (B, T))
    encoder_memory = jax.random.normal(k_mem, (B, S_ENC, D), jnp.float32)
    cross_attention_mask = jnp.ones((B, 1, 1, S_ENC), jnp.float32)

    logits = decoder(tgt, tgt_type_ids, tgt_position_ids,
                     encoder_memory, cross_attention_mask)
    logits = jax.block_until_ready(logits)

    # Sanity checks:
    #  - vs a bf16-input / f32-accumulate reference (kernel numerics)
    #  - vs the full-f32 reference with bf16-level tolerances (documented).
    hidden_ref = (decoder.wte[tgt] + decoder.wpe[tgt_position_ids]
                  + decoder.tte[tgt_type_ids])
    ref_bf16 = jnp.einsum("btd,vd->btv",
                          hidden_ref.astype(jnp.bfloat16),
                          decoder.wte.astype(jnp.bfloat16),
                          preferred_element_type=jnp.float32)
    ref_f32 = jnp.einsum("btd,vd->btv", hidden_ref, decoder.wte)

    logits_f32 = logits.astype(jnp.float32)
    assert logits.shape == (B, T, V)
    assert jnp.allclose(logits_f32, ref_bf16, atol=1e-3, rtol=1e-2), \
        "mismatch vs bf16 reference"
    assert jnp.allclose(logits_f32, ref_f32, atol=5e-3, rtol=5e-2), \
        "mismatch vs f32 reference (bf16-level tolerance)"

    print("KERNEL_OK")
</pallas_src>

<mosaic_0001>
module attributes {stable_mosaic.version = 11 : i64} {
  func.func @_lm_head_kernel(%arg0: i32, %arg1: i32, %arg2: memref<16x32xf32, #tpu.memory_space<vmem>>, %arg3: memref<32x256xbf16, #tpu.memory_space<vmem>>, %arg4: memref<16x256xbf16, #tpu.memory_space<vmem>>) attributes {dimension_semantics = [#tpu.dimension_semantics<parallel>, #tpu.dimension_semantics<parallel>], iteration_bounds = array<i64: 1, 1>, scalar_prefetch = 0 : i64, scratch_operands = 0 : i64, tpu.core_type = #tpu.core_type<tc>, window_params = [{transform_indices = @transform_0, window_bounds = array<i64: 16, 32>}, {transform_indices = @transform_1, window_bounds = array<i64: 32, 256>}, {transform_indices = @transform_2, window_bounds = array<i64: 16, 256>}]} {
    %c0 = arith.constant 0 : index
    %c0_0 = arith.constant 0 : index
    %0 = vector.load %arg2[%c0, %c0_0] : memref<16x32xf32, #tpu.memory_space<vmem>>, vector<16x32xf32>
    %1 = arith.truncf %0 : vector<16x32xf32> to vector<16x32xbf16>
    %c0_1 = arith.constant 0 : index
    %c0_2 = arith.constant 0 : index
    %2 = vector.load %arg3[%c0_1, %c0_2] : memref<32x256xbf16, #tpu.memory_space<vmem>>, vector<32x256xbf16>
    %cst = arith.constant dense<0.000000e+00> : vector<16x256xf32>
    %3 = tpu.matmul %1, %2, %cst {dimension_numbers = #tpu.dot_dimension_numbers<[1], [0], [0], [1], [0, 0, 1, 1], [], []>} : vector<16x32xbf16>, vector<32x256xbf16>, vector<16x256xf32> -> vector<16x256xf32>
    %4 = arith.truncf %3 : vector<16x256xf32> to vector<16x256xbf16>
    %c0_3 = arith.constant 0 : index
    %c0_4 = arith.constant 0 : index
    %5 = vector.load %arg4[%c0_3, %c0_4] : memref<16x256xbf16, #tpu.memory_space<vmem>>, vector<16x256xbf16>
    tpu.vector_store %arg4[%c0_3, %c0_4], %4 {strides = array<i32>} : memref<16x256xbf16, #tpu.memory_space<vmem>>, vector<16x256xbf16>,
    return
  }
  func.func @transform_0(%arg0: i32, %arg1: i32) -> (i32, i32) {
    %c0_i32 = arith.constant 0 : i32
    %c0_i32_0 = arith.constant 0 : i32
    return %arg0, %c0_i32 : i32, i32
  }
  func.func @transform_1(%arg0: i32, %arg1: i32) -> (i32, i32) {
    %c0_i32 = arith.constant 0 : i32
    %c0_i32_0 = arith.constant 0 : i32
    return %c0_i32, %arg1 : i32, i32
  }
  func.func @transform_2(%arg0: i32, %arg1: i32) -> (i32, i32) {
    %c0_i32 = arith.constant 0 : i32
    return %arg0, %arg1 : i32, i32
  }
}

</mosaic_0001>

<bundles_post_ra>
// kernel: tpu_custom_call.1
= control target key start
LH: loop header
LB: loop body
LE: loop exit
PB: predicated region body
PF: predicated region fallthrough
CT: control target
= control target key end

     0   :  { %7 = vsyncpa [#allocation3], 0  ;;  %s306_s0 = inlined_call_operand.hbm [shape: f32[16,32], index: 0, kind: input, shape index: {}]   ;;  %s307_s1 = inlined_call_operand.hbm [shape: bf16[32,256], index: 1, kind: input, shape index: {}]   ;;  %s308_s2 = inlined_call_operand.hbm [shape: bf16[16,256], index: 2, kind: output, shape index: {}]  }
   0x1   :  { %8 = vsyncpa [#allocation6], 0 }
   0x2   :  { %9 = vsyncpa [#allocation4], 0  ;;  %s240_s9 = smov [#allocation2]   ;;  %s168_s13 = scalar_lea.hbm %s306_s0, 256 }
   0x3   :  { %s15_s10 = sshll.u32 %s240_s9, 4  ;;  %p169_p0 = scmp.ne.s32.totalorder %s306_s0, %s168_s13  ;;  %s16_s10 = int_to_ptr.vmem [resolvable:$true] %s15_s10 }
   0x4   :  { %p172_p1 = scmp.lt.u32.totalorder %s168_s13, %s306_s0 }
   0x6   :  { %p174_p2 = pnand %p172_p1, %p169_p0 }
   0x8   :  { %177 = shalt.err (!%p174_p2)
}
   0x9   :  { %s178_s18 = scalar_lea.vmem %s16_s10, 256  ;;  %p183_p4 = scmp.lt.s32.totalorder %s16_s10, %s16_s10 }
   0xa   :  { %p179_p3 = scmp.ne.s32.totalorder %s16_s10, %s178_s18  ;;  %p184_p5 = scmp.lt.s32.totalorder %s178_s18, %s178_s18 }
   0xc   :  { %p185_p6 = por %p184_p5, %p183_p4 }
   0xe   :  { %p186_p7 = pnand %p185_p6, %p179_p3 }
  0x10   :  { %189 = shalt.err (!%p186_p7)
}
  0x11   :  { %s241_s19 = smov 128   ;;  %s242_s20 = smov 8  }
  0x12   :  { %21 = dma.hbm_to_vmem [thread:$0]  %s306_s0, 256, %s16_s10, [#allocation3], %s241_s19, %s241_s19, %s242_s20  }
  0x13   :  { %s243_s23 = smov [#allocation5]   ;;  %s190_s27 = scalar_lea.hbm %s307_s1, 512 }
  0x14   :  { %s27_s24 = sshll.u32 %s243_s23, 4  ;;  %p191_p8 = scmp.ne.s32.totalorder %s307_s1, %s190_s27  ;;  %s28_s24 = int_to_ptr.vmem [resolvable:$true] %s27_s24 }
  0x15   :  { %p194_p9 = scmp.lt.u32.totalorder %s190_s27, %s307_s1 }
  0x17   :  { %p196_p10 = pnand %p194_p9, %p191_p8 }
  0x19   :  { %199 = shalt.err (!%p196_p10)
}
  0x1a   :  { %s200_s4 = scalar_lea.vmem %s28_s24, 512  ;;  %p205_p12 = scmp.lt.s32.totalorder %s28_s24, %s28_s24 }
  0x1b   :  { %p201_p11 = scmp.ne.s32.totalorder %s28_s24, %s200_s4  ;;  %p206_p13 = scmp.lt.s32.totalorder %s200_s4, %s200_s4 }
  0x1d   :  { %p207_p0 = por %p206_p13, %p205_p12 }
  0x1f   :  { %p208_p1 = pnand %p207_p0, %p201_p11 }
  0x21   :  { %211 = shalt.err (!%p208_p1)
}
  0x22   :  { %33 = dma.hbm_to_vmem [thread:$0]  %s307_s1, 512, %s28_s24, [#allocation6], %s241_s19, %s241_s19, %s242_s20  }
  0x23   :  { %234 = dma.done.wait [#allocation3], 256  }
  0x24   :  { %235 = vsyncadd [#allocation3], 4294967040 }
  0x25   :  { %236 = dma.done.wait [#allocation6], 512  }
  0x26   :  { %237 = vsyncadd [#allocation6], 4294966784  ;;  %v244_v0 = vmov 0   ;;  %v162_v1 = vld [vmem:[#allocation5 + $0x4] ss:$8 sps:$4 sm:$0xff]   ;;  %v41_v5 = vld [vmem:[#allocation2] sm:$0xff] }
  0x27   :  { %104 = vmatprep.mubr.bf16.mxu0 %v244_v0  ;;  %v164_v2 = vld [vmem:[#allocation5] ss:$8 sps:$4 sm:$0xff]   ;;  %72 = vmatprep.subr.bf16.mxu0 %v162_v1  ;;  %v165_v3 = vld [vmem:[#allocation5 + $0x14] ss:$8 sps:$4 sm:$0xff]   ;;  %v167_v4 = vld [vmem:[#allocation5 + $0x10] ss:$8 sps:$4 sm:$0xff]  }
  0x28   :  { %73 = vmatpush1.bf16.msra.mxu0 %v164_v2  ;;  %v42_v6 = vld [vmem:[#allocation2 + $0x8] sm:$0xff]  ;;  %vm68_vm0 = vcmask 261120   ;;  %s245_s1 = smov [#allocation7]  }
  0x29   :  { %74 = vmatprep.subr.bf16.mxu0 %v165_v3  ;;  %v43_v7 = vpack.c.bf16 %v42_v6, %v41_v5  ;;  %s134_s6 = sshll.u32 %s245_s1, 4  ;;  %s135_s6 = int_to_ptr.vmem [resolvable:$true] %s134_s6 }
  0x2a   :  { %s212_s7 = scalar_lea.vmem %s135_s6, 256  ;;  %p217_p3 = scmp.lt.s32.totalorder %s135_s6, %s135_s6 }
  0x2b   :  { %p213_p2 = scmp.ne.s32.totalorder %s135_s6, %s212_s7  ;;  %p218_p4 = scmp.lt.s32.totalorder %s212_s7, %s212_s7 }
  0x2c   :  { %75 = vmatpush1.bf16.msra.mxu0 %v167_v4 }
  0x2d   :  { %p219_p5 = por %p218_p4, %p217_p3 }
  0x2f   :  { %151 = vmatmul.mubr.msk.bf16.vlgmr.msra.gmra.mrb[0].mxu0 %vm68_vm0, %v43_v7  ;;  %p220_p6 = pnand %p219_p5, %p213_p2 }
 0x102   :  { %v106_v8 = vpop.f32.mrb[0].mxu0 }
 0x103   :  { %v108_v9 = vpop.f32.mrb[1].mxu0 }
 0x104   :  { %v154_v10 = vpack.c.bf16 %v108_v9, %v106_v8  ;;  %v110_v11 = vpop.f32.mrb[2].mxu0 }
 0x105   :  { %v112_v12 = vpop.f32.mrb[3].mxu0 }
 0x106   :  { %127 = vst [vmem:[#allocation7] sm:$0xff] %v154_v10  ;;  %v155_v13 = vpack.c.bf16 %v112_v12, %v110_v11 }
 0x108   :  { %128 = vst [vmem:[#allocation7 + $0x8] sm:$0xff] %v155_v13 }
 0x109   :  { %223 = shalt.err (!%p220_p6)
}
 0x10a   :  { %s224_s10 = scalar_lea.hbm %s308_s2, 256 }
 0x10b   :  { %p225_p7 = scmp.ne.s32.totalorder %s308_s2, %s224_s10  ;;  %p228_p8 = scmp.lt.u32.totalorder %s224_s10, %s308_s2 }
 0x10d   :  { %p230_p9 = pnand %p228_p8, %p225_p7 }
 0x10f   :  { %233 = shalt.err (!%p230_p9)
}
 0x110   :  { %140 = dma.vmem_to_hbm [thread:$0]  %s135_s6, 256, %s308_s2, [#allocation4], %s241_s19, %s241_s19, %s242_s20  }
 0x111   :  { %238 = dma.done.wait [#allocation4], 256  }
 0x112   :  { %239 = vsyncadd [#allocation4], 4294967040 }
 0x113   :  { %144 = vsyncpa [#allocation3], 1 }
 0x114   :  { %145 = vsyncpa [#allocation6], 1 }
 0x115   :  { %146 = vsyncpa [#allocation4], 1 }

</bundles_post_ra>
